<compile_context>
chip_gen: v7x
topology: tpu7x:2x2x1
jax: 0.10.0
libtpu: 0.0.40
codegen_flags: <defaults>
</compile_context>

<pallas_src>
import jax
import jax.numpy as jnp
from jax.experimental import pallas as pl
from jax.experimental.pallas import tpu as pltpu

LANE = 128      # lane width: hidden feature dims padded to a multiple of this
MAX_TB = 2048   # max batch-tile rows (fits comfortably in every gen's VMEM)


def _round_up(n, m):
    return ((n + m - 1) // m) * m


def _p2s_kernel(x_ref,
                w1_ref, b1_ref,
                w2_ref, b2_ref,
                w3_ref, b3_ref,
                w4_ref, b4_ref,
                o_ref):
    """Fused MLP hot path: 4 MXU matmuls + f32 bias/ReLU on one VMEM tile.

    MXU operands are cast to the weight dtype (bf16 or f32) right before each
    dot; accumulation is always f32 (`preferred_element_type`), and all
    element-wise work (bias add, ReLU) runs in f32.
    """
    cd = w1_ref.dtype

    x = x_ref[...].astype(cd)

    y = jnp.dot(x, w1_ref[...], preferred_element_type=jnp.float32) + b1_ref[...]
    y = jnp.maximum(y, 0.0)

    y = jnp.dot(y.astype(cd), w2_ref[...],
                preferred_element_type=jnp.float32) + b2_ref[...]
    y = jnp.maximum(y, 0.0)

    y = jnp.dot(y.astype(cd), w3_ref[...],
                preferred_element_type=jnp.float32) + b3_ref[...]
    y = jnp.maximum(y, 0.0)

    out = jnp.dot(y.astype(cd), w4_ref[...],
                  preferred_element_type=jnp.float32) + b4_ref[...]
    o_ref[...] = out.astype(o_ref.dtype)


def p2s_forward(x, params, *, compute_dtype=jnp.bfloat16, max_tile=MAX_TB):
    """x: [B, input_dim] float32.  params: w1..w4 ([in, out]) and b1..b4 ([1, out]).

    compute_dtype: dtype of the MXU operands (weights + casted activations).
    Accumulation, bias add, ReLU and the output are always f32.
    """
    B, in_dim = x.shape
    hidden = params["w1"].shape[1]
    out_dim = params["w4"].shape[1]
    h_p = _round_up(hidden, LANE)   # hidden lanes padded 100 -> 128

    def pad2(a, rows, cols, dtype):
        return jnp.pad(a, ((0, rows - a.shape[0]),
                           (0, cols - a.shape[1]))).astype(dtype)

    # Pad only the (tiny) weights/biases on the hidden dims; padded columns of
    # w/b are zero so padded hidden lanes stay exactly zero (ReLU keeps them 0).
    # w4 is padded only on its input (row) dim; its output dim stays 100.
    w1 = pad2(params["w1"], in_dim, h_p, compute_dtype)
    w2 = pad2(params["w2"], h_p, h_p, compute_dtype)
    w3 = pad2(params["w3"], h_p, h_p, compute_dtype)
    w4 = pad2(params["w4"], h_p, out_dim, compute_dtype)
    b1 = pad2(params["b1"], 1, h_p, jnp.float32)
    b2 = pad2(params["b2"], 1, h_p, jnp.float32)
    b3 = pad2(params["b3"], 1, h_p, jnp.float32)
    b4 = params["b4"].astype(jnp.float32)                      # [1, out_dim]

    # Batch tile: multiple of 8 sublanes, capped at max_tile, and sized so the
    # grid has >=2 steps whenever B > 8 (both TensorCores on v7x). No batch
    # padding: the partial final block is masked by Pallas (rows independent).
    tb = max(8, min(max_tile, _round_up(pl.cdiv(B, 2), 8)))
    grid = (pl.cdiv(B, tb),)

    x_spec = pl.BlockSpec((tb, in_dim), lambda i: (i, 0))       # 33-wide, no pad
    o_spec = pl.BlockSpec((tb, out_dim), lambda i: (i, 0))      # 100-wide output
    # Weights/biases: same block every grid step -> stay VMEM-resident.
    w1_spec = pl.BlockSpec((in_dim, h_p), lambda i: (0, 0))
    w2_spec = pl.BlockSpec((h_p, h_p), lambda i: (0, 0))
    w3_spec = pl.BlockSpec((h_p, h_p), lambda i: (0, 0))
    w4_spec = pl.BlockSpec((h_p, out_dim), lambda i: (0, 0))
    b1_spec = pl.BlockSpec((1, h_p), lambda i: (0, 0))
    b2_spec = pl.BlockSpec((1, h_p), lambda i: (0, 0))
    b3_spec = pl.BlockSpec((1, h_p), lambda i: (0, 0))
    b4_spec = pl.BlockSpec((1, out_dim), lambda i: (0, 0))

    cbytes = jnp.dtype(compute_dtype).itemsize
    flops = 2 * B * (in_dim * h_p + 2 * h_p * h_p + h_p * out_dim)
    bytes_accessed = (
        B * in_dim * 4                                              # x in (f32)
        + B * out_dim * 4                                           # out (f32)
        + (in_dim * h_p + 2 * h_p * h_p + h_p * out_dim) * cbytes   # weights
        + (3 * h_p + out_dim) * 4                                   # biases (f32)
    )
    cost = pl.CostEstimate(flops=flops, transcendentals=0,
                           bytes_accessed=bytes_accessed)

    return pl.pallas_call(
        _p2s_kernel,
        out_shape=jax.ShapeDtypeStruct((B, out_dim), jnp.float32),
        grid=grid,
        in_specs=[x_spec,
                  w1_spec, b1_spec,
                  w2_spec, b2_spec,
                  w3_spec, b3_spec,
                  w4_spec, b4_spec],
        out_specs=o_spec,
        compiler_params=pltpu.CompilerParams(
            dimension_semantics=("parallel",)),
        cost_estimate=cost,
    )(x, w1, b1, w2, b2, w3, b3, w4, b4)


def init_p2s_params(key, input_dim=33, output_dim=100, hidden=100):
    """Deterministic init mimicking PyTorch nn.Linear default:
    U(-1/sqrt(fan_in), 1/sqrt(fan_in)) for both weight and bias."""
    dims = [(input_dim, hidden), (hidden, hidden), (hidden, hidden), (hidden, output_dim)]
    params = {}
    keys = jax.random.split(key, 2 * len(dims))
    for i, (fan_in, fan_out) in enumerate(dims):
        bound = 1.0 / (fan_in ** 0.5)
        w = jax.random.uniform(keys[2 * i], (fan_in, fan_out),
                               minval=-bound, maxval=bound, dtype=jnp.float32)
        b = jax.random.uniform(keys[2 * i + 1], (1, fan_out),
                               minval=-bound, maxval=bound, dtype=jnp.float32)
        params[f"w{i + 1}"] = w
        params[f"b{i + 1}"] = b
    return params


def p2s_reference(x, params, compute_dtype=jnp.float32):
    """Pure-JAX reference with the same operand dtypes / f32 accumulation."""
    prec = jax.lax.Precision.HIGHEST if compute_dtype == jnp.float32 else None

    def lin(a, w, b):
        return jnp.dot(a.astype(compute_dtype), w.astype(compute_dtype),
                       preferred_element_type=jnp.float32,
                       precision=prec) + b

    y = jnp.maximum(lin(x, params["w1"], params["b1"]), 0.0)
    y = jnp.maximum(lin(y, params["w2"], params["b2"]), 0.0)
    y = jnp.maximum(lin(y, params["w3"], params["b3"]), 0.0)
    return lin(y, params["w4"], params["b4"])


if __name__ == "__main__":
    key = jax.random.PRNGKey(0)
    k_param, k_x, k_x2 = jax.random.split(key, 3)

    input_dim, output_dim, batch = 33, 100, 8
    params = init_p2s_params(k_param, input_dim=input_dim, output_dim=output_dim)
    x = jax.random.normal(k_x, (batch, input_dim), dtype=jnp.float32)

    # Default path: bf16 MXU operands, f32 accumulation/output.
    out_bf16 = jax.block_until_ready(p2s_forward(x, params))
    ref_bf16 = p2s_reference(x, params, compute_dtype=jnp.bfloat16)
    assert out_bf16.shape == (batch, output_dim)
    assert jnp.allclose(out_bf16, ref_bf16, atol=2e-2, rtol=2e-2)

    # f32-operand path (matches the PyTorch module's numerics more closely).
    out_f32 = jax.block_until_ready(p2s_forward(x, params, compute_dtype=jnp.float32))
    ref_f32 = p2s_reference(x, params, compute_dtype=jnp.float32)
    assert jnp.allclose(out_f32, ref_f32, atol=1e-3, rtol=1e-3)

    # Exercise a multi-step grid plus a masked partial final block (B=300,
    # tb=152 -> 2 grid steps, second block only 148 valid rows).
    x_big = jax.random.normal(k_x2, (300, input_dim), dtype=jnp.float32)
    out_big = jax.block_until_ready(p2s_forward(x_big, params))
    ref_big = p2s_reference(x_big, params, compute_dtype=jnp.bfloat16)
    assert out_big.shape == (300, output_dim)
    assert jnp.allclose(out_big, ref_big, atol=2e-2, rtol=2e-2)

    out_big_f32 = jax.block_until_ready(
        p2s_forward(x_big, params, compute_dtype=jnp.float32))
    ref_big_f32 = p2s_reference(x_big, params, compute_dtype=jnp.float32)
    assert jnp.allclose(out_big_f32, ref_big_f32, atol=1e-3, rtol=1e-3)

    print("KERNEL_OK")
</pallas_src>

<mosaic_0001>
module attributes {stable_mosaic.version = 11 : i64} {
  func.func @_p2s_kernel(%arg0: i32, %arg1: memref<8x33xf32, #tpu.memory_space<vmem>>, %arg2: memref<33x128xbf16, #tpu.memory_space<vmem>>, %arg3: memref<1x128xf32, #tpu.memory_space<vmem>>, %arg4: memref<128x128xbf16, #tpu.memory_space<vmem>>, %arg5: memref<1x128xf32, #tpu.memory_space<vmem>>, %arg6: memref<128x128xbf16, #tpu.memory_space<vmem>>, %arg7: memref<1x128xf32, #tpu.memory_space<vmem>>, %arg8: memref<128x100xbf16, #tpu.memory_space<vmem>>, %arg9: memref<1x100xf32, #tpu.memory_space<vmem>>, %arg10: memref<8x100xf32, #tpu.memory_space<vmem>>) attributes {dimension_semantics = [#tpu.dimension_semantics<parallel>], iteration_bounds = array<i64: 1>, scalar_prefetch = 0 : i64, scratch_operands = 0 : i64, tpu.core_type = #tpu.core_type<tc>, window_params = [{transform_indices = @transform_0, window_bounds = array<i64: 8, 33>}, {pipeline_mode = #tpu.pipeline_mode<synchronous>, transform_indices = @transform_1, window_bounds = array<i64: 33, 128>}, {pipeline_mode = #tpu.pipeline_mode<synchronous>, transform_indices = @transform_2, window_bounds = array<i64: 1, 128>}, {pipeline_mode = #tpu.pipeline_mode<synchronous>, transform_indices = @transform_3, window_bounds = array<i64: 128, 128>}, {pipeline_mode = #tpu.pipeline_mode<synchronous>, transform_indices = @transform_4, window_bounds = array<i64: 1, 128>}, {pipeline_mode = #tpu.pipeline_mode<synchronous>, transform_indices = @transform_5, window_bounds = array<i64: 128, 128>}, {pipeline_mode = #tpu.pipeline_mode<synchronous>, transform_indices = @transform_6, window_bounds = array<i64: 1, 128>}, {pipeline_mode = #tpu.pipeline_mode<synchronous>, transform_indices = @transform_7, window_bounds = array<i64: 128, 100>}, {pipeline_mode = #tpu.pipeline_mode<synchronous>, transform_indices = @transform_8, window_bounds = array<i64: 1, 100>}, {transform_indices = @transform_9, window_bounds = array<i64: 8, 100>}]} {
    %c0 = arith.constant 0 : index
    %c0_0 = arith.constant 0 : index
    %0 = vector.load %arg1[%c0, %c0_0] : memref<8x33xf32, #tpu.memory_space<vmem>>, vector<8x33xf32>
    %1 = arith.truncf %0 : vector<8x33xf32> to vector<8x33xbf16>
    %c0_1 = arith.constant 0 : index
    %c0_2 = arith.constant 0 : index
    %2 = vector.load %arg2[%c0_1, %c0_2] : memref<33x128xbf16, #tpu.memory_space<vmem>>, vector<33x128xbf16>
    %cst = arith.constant dense<0.000000e+00> : vector<8x128xf32>
    %3 = tpu.matmul %1, %2, %cst {dimension_numbers = #tpu.dot_dimension_numbers<[1], [0], [0], [1], [0, 0, 1, 1], [], []>} : vector<8x33xbf16>, vector<33x128xbf16>, vector<8x128xf32> -> vector<8x128xf32>
    %c0_3 = arith.constant 0 : index
    %c0_4 = arith.constant 0 : index
    %4 = vector.load %arg3[%c0_3, %c0_4] : memref<1x128xf32, #tpu.memory_space<vmem>>, vector<1x128xf32>
    %5 = vector.broadcast %4 : vector<1x128xf32> to vector<8x128xf32>
    %6 = arith.addf %3, %5 : vector<8x128xf32>
    %cst_5 = arith.constant 0.000000e+00 : f32
    %7 = vector.broadcast %cst_5 : f32 to vector<8x128xf32>
    %8 = arith.maximumf %6, %7 : vector<8x128xf32>
    %9 = arith.truncf %8 : vector<8x128xf32> to vector<8x128xbf16>
    %c0_6 = arith.constant 0 : index
    %c0_7 = arith.constant 0 : index
    %10 = vector.load %arg4[%c0_6, %c0_7] : memref<128x128xbf16, #tpu.memory_space<vmem>>, vector<128x128xbf16>
    %cst_8 = arith.constant dense<0.000000e+00> : vector<8x128xf32>
    %11 = tpu.matmul %9, %10, %cst_8 {dimension_numbers = #tpu.dot_dimension_numbers<[1], [0], [0], [1], [0, 0, 1, 1], [], []>} : vector<8x128xbf16>, vector<128x128xbf16>, vector<8x128xf32> -> vector<8x128xf32>
    %c0_9 = arith.constant 0 : index
    %c0_10 = arith.constant 0 : index
    %12 = vector.load %arg5[%c0_9, %c0_10] : memref<1x128xf32, #tpu.memory_space<vmem>>, vector<1x128xf32>
    %13 = vector.broadcast %12 : vector<1x128xf32> to vector<8x128xf32>
    %14 = arith.addf %11, %13 : vector<8x128xf32>
    %cst_11 = arith.constant 0.000000e+00 : f32
    %15 = vector.broadcast %cst_11 : f32 to vector<8x128xf32>
    %16 = arith.maximumf %14, %15 : vector<8x128xf32>
    %17 = arith.truncf %16 : vector<8x128xf32> to vector<8x128xbf16>
    %c0_12 = arith.constant 0 : index
    %c0_13 = arith.constant 0 : index
    %18 = vector.load %arg6[%c0_12, %c0_13] : memref<128x128xbf16, #tpu.memory_space<vmem>>, vector<128x128xbf16>
    %cst_14 = arith.constant dense<0.000000e+00> : vector<8x128xf32>
    %19 = tpu.matmul %17, %18, %cst_14 {dimension_numbers = #tpu.dot_dimension_numbers<[1], [0], [0], [1], [0, 0, 1, 1], [], []>} : vector<8x128xbf16>, vector<128x128xbf16>, vector<8x128xf32> -> vector<8x128xf32>
    %c0_15 = arith.constant 0 : index
    %c0_16 = arith.constant 0 : index
    %20 = vector.load %arg7[%c0_15, %c0_16] : memref<1x128xf32, #tpu.memory_space<vmem>>, vector<1x128xf32>
    %21 = vector.broadcast %20 : vector<1x128xf32> to vector<8x128xf32>
    %22 = arith.addf %19, %21 : vector<8x128xf32>
    %cst_17 = arith.constant 0.000000e+00 : f32
    %23 = vector.broadcast %cst_17 : f32 to vector<8x128xf32>
    %24 = arith.maximumf %22, %23 : vector<8x128xf32>
    %25 = arith.truncf %24 : vector<8x128xf32> to vector<8x128xbf16>
    %c0_18 = arith.constant 0 : index
    %c0_19 = arith.constant 0 : index
    %26 = vector.load %arg8[%c0_18, %c0_19] : memref<128x100xbf16, #tpu.memory_space<vmem>>, vector<128x100xbf16>
    %cst_20 = arith.constant dense<0.000000e+00> : vector<8x100xf32>
    %27 = tpu.matmul %25, %26, %cst_20 {dimension_numbers = #tpu.dot_dimension_numbers<[1], [0], [0], [1], [0, 0, 1, 1], [], []>} : vector<8x128xbf16>, vector<128x100xbf16>, vector<8x100xf32> -> vector<8x100xf32>
    %c0_21 = arith.constant 0 : index
    %c0_22 = arith.constant 0 : index
    %28 = vector.load %arg9[%c0_21, %c0_22] : memref<1x100xf32, #tpu.memory_space<vmem>>, vector<1x100xf32>
    %29 = vector.broadcast %28 : vector<1x100xf32> to vector<8x100xf32>
    %30 = arith.addf %27, %29 : vector<8x100xf32>
    %c0_23 = arith.constant 0 : index
    %c0_24 = arith.constant 0 : index
    %31 = vector.load %arg10[%c0_23, %c0_24] : memref<8x100xf32, #tpu.memory_space<vmem>>, vector<8x100xf32>
    tpu.vector_store %arg10[%c0_23, %c0_24], %30 {strides = array<i32>} : memref<8x100xf32, #tpu.memory_space<vmem>>, vector<8x100xf32>,
    return
  }
  func.func @transform_0(%arg0: i32) -> (i32, i32) {
    %c0_i32 = arith.constant 0 : i32
    %c0_i32_0 = arith.constant 0 : i32
    return %arg0, %c0_i32 : i32, i32
  }
  func.func @transform_1(%arg0: i32) -> (i32, i32) {
    %c0_i32 = arith.constant 0 : i32
    %c0_i32_0 = arith.constant 0 : i32
    %c0_i32_1 = arith.constant 0 : i32
    return %c0_i32, %c0_i32_0 : i32, i32
  }
  func.func @transform_2(%arg0: i32) -> (i32, i32) {
    %c0_i32 = arith.constant 0 : i32
    %c0_i32_0 = arith.constant 0 : i32
    %c0_i32_1 = arith.constant 0 : i32
    return %c0_i32, %c0_i32_0 : i32, i32
  }
  func.func @transform_3(%arg0: i32) -> (i32, i32) {
    %c0_i32 = arith.constant 0 : i32
    %c0_i32_0 = arith.constant 0 : i32
    %c0_i32_1 = arith.constant 0 : i32
    return %c0_i32, %c0_i32_0 : i32, i32
  }
  func.func @transform_4(%arg0: i32) -> (i32, i32) {
    %c0_i32 = arith.constant 0 : i32
    %c0_i32_0 = arith.constant 0 : i32
    %c0_i32_1 = arith.constant 0 : i32
    return %c0_i32, %c0_i32_0 : i32, i32
  }
  func.func @transform_5(%arg0: i32) -> (i32, i32) {
    %c0_i32 = arith.constant 0 : i32
    %c0_i32_0 = arith.constant 0 : i32
    %c0_i32_1 = arith.constant 0 : i32
    return %c0_i32, %c0_i32_0 : i32, i32
  }
  func.func @transform_6(%arg0: i32) -> (i32, i32) {
    %c0_i32 = arith.constant 0 : i32
    %c0_i32_0 = arith.constant 0 : i32
    %c0_i32_1 = arith.constant 0 : i32
    return %c0_i32, %c0_i32_0 : i32, i32
  }
  func.func @transform_7(%arg0: i32) -> (i32, i32) {
    %c0_i32 = arith.constant 0 : i32
    %c0_i32_0 = arith.constant 0 : i32
    %c0_i32_1 = arith.constant 0 : i32
    return %c0_i32, %c0_i32_0 : i32, i32
  }
  func.func @transform_8(%arg0: i32) -> (i32, i32) {
    %c0_i32 = arith.constant 0 : i32
    %c0_i32_0 = arith.constant 0 : i32
    %c0_i32_1 = arith.constant 0 : i32
    return %c0_i32, %c0_i32_0 : i32, i32
  }
  func.func @transform_9(%arg0: i32) -> (i32, i32) {
    %c0_i32 = arith.constant 0 : i32
    %c0_i32_0 = arith.constant 0 : i32
    return %arg0, %c0_i32 : i32, i32
  }
}

</mosaic_0001>

<bundles_post_ra>
// kernel: tpu_custom_call.1
= control target key start
LH: loop header
LB: loop body
LE: loop exit
PB: predicated region body
PF: predicated region fallthrough
CT: control target
= control target key end

     0   :  { %14 = vsyncpa [#allocation3], 0  ;;  %s956_s0 = inlined_call_operand.hbm [shape: f32[8,33], index: 0, kind: input, shape index: {}]   ;;  %s957_s1 = inlined_call_operand.hbm [shape: bf16[33,128], index: 1, kind: input, shape index: {}]   ;;  %s958_s2 = inlined_call_operand.vmem [shape: f32[1,128], index: 2, kind: input, shape index: {}]   ;;  %s959_s3 = inlined_call_operand.vmem [shape: bf16[128,128], index: 3, kind: input, shape index: {}]   ;;  %s960_s4 = inlined_call_operand.vmem [shape: f32[1,128], index: 4, kind: input, shape index: {}]   ;;  %s961_s5 = inlined_call_operand.vmem [shape: bf16[128,128], index: 5, kind: input, shape index: {}]   ;;  %s962_s6 = inlined_call_operand.vmem [shape: f32[1,128], index: 6, kind: input, shape index: {}]   ;;  %s963_s7 = inlined_call_operand.vmem [shape: bf16[128,100], index: 7, kind: input, shape index: {}]   ;;  %s964_s8 = inlined_call_operand.vmem [shape: f32[1,100], index: 8, kind: input, shape index: {}]   ;;  %s965_s9 = inlined_call_operand.hbm [shape: f32[8,100], index: 9, kind: output, shape index: {}]  }
   0x1   :  { %15 = vsyncpa [#allocation6], 0 }
   0x2   :  { %16 = vsyncpa [#allocation4], 0  ;;  %s736_s30 = smov [#allocation2]   ;;  %s737_s11 = smov [#allocation5]  }
   0x3   :  { %s23_s10 = sshll.u32 %s736_s30, 4  ;;  %s32_s12 = sshll.u32 %s737_s11, 4  ;;  %s24_s10 = int_to_ptr.vmem [resolvable:$true] %s23_s10  ;;  %s794_s12 = int_to_ptr.vmem [resolvable:$true] %s32_s12 }
   0x4   :  { %s664_s15 = scalar_lea.hbm %s956_s0, 128 }
   0x5   :  { %p665_p0 = scmp.ne.s32.totalorder %s956_s0, %s664_s15  ;;  %p668_p1 = scmp.lt.u32.totalorder %s664_s15, %s956_s0 }
   0x7   :  { %p670_p2 = pnand %p668_p1, %p665_p0 }
   0x9   :  { %673 = shalt.err (!%p670_p2)
}
   0xa   :  { %s674_s20 = scalar_lea.vmem %s24_s10, 128  ;;  %p679_p4 = scmp.lt.s32.totalorder %s24_s10, %s24_s10 }
   0xb   :  { %p675_p3 = scmp.ne.s32.totalorder %s24_s10, %s674_s20  ;;  %p680_p5 = scmp.lt.s32.totalorder %s674_s20, %s674_s20 }
   0xd   :  { %p681_p6 = por %p680_p5, %p679_p4 }
   0xf   :  { %p682_p7 = pnand %p681_p6, %p675_p3 }
  0x11   :  { %685 = shalt.err (!%p682_p7)
}
  0x12   :  { %26 = dma.hbm_to_vmem [thread:$0]  %s956_s0, 128, %s24_s10, [#allocation3]  }
  0x13   :  { %s686_s25 = scalar_lea.hbm %s957_s1, 320 }
  0x14   :  { %p687_p8 = scmp.ne.s32.totalorder %s957_s1, %s686_s25  ;;  %p690_p9 = scmp.lt.u32.totalorder %s686_s25, %s957_s1 }
  0x16   :  { %p692_p10 = pnand %p690_p9, %p687_p8 }
  0x18   :  { %695 = shalt.err (!%p692_p10)
}
  0x19   :  { %s696_s30 = scalar_lea.vmem %s794_s12, 320  ;;  %p701_p12 = scmp.lt.s32.totalorder %s794_s12, %s794_s12 }
  0x1a   :  { %p697_p11 = scmp.ne.s32.totalorder %s794_s12, %s696_s30  ;;  %p702_p13 = scmp.lt.s32.totalorder %s696_s30, %s696_s30 }
  0x1c   :  { %p703_p0 = por %p702_p13, %p701_p12 }
  0x1e   :  { %p704_p1 = pnand %p703_p0, %p697_p11 }
  0x20   :  { %707 = shalt.err (!%p704_p1)
}
  0x21   :  { %s738_s0 = smov 64   ;;  %s739_s10 = smov 4  }
  0x22   :  { %38 = dma.hbm_to_vmem [thread:$0]  %s957_s1, 320, %s794_s12, [#allocation6], %s738_s0, %s738_s0, %s739_s10  }
  0x23   :  { %730 = dma.done.wait [#allocation3], 128  }
  0x24   :  { %731 = vsyncadd [#allocation3], 4294967168 }
  0x25   :  { %732 = dma.done.wait [#allocation6], 320  }
  0x26   :  { %733 = vsyncadd [#allocation6], 4294966976  ;;  %v740_v0 = vmov 0.0   ;;  %vm741_vm0 = vmmov 0   ;;  %vm93_vm1 = vcmask 1040384   ;;  %v637_v1 = vld [vmem:[#allocation5] sm:$0xff]  }
  0x27   :  { %559 = vmatprep.subr.bf16.mxu0 %v740_v0  ;;  %565 = vmatprep.mubr.msk.bf16.mxu0 %vm741_vm0, %v740_v0  ;;  %v638_v2 = vld [vmem:[#allocation5 + $0x8] sm:$0xff]   ;;  %v639_v3 = vld [vmem:[#allocation5 + $0x10] ss:$0 sps:$4 sm:$0x11]   ;;  %v742_v4 = vmov 0   ;;  %v640_v6 = vld [vmem:[%s959_s3] sm:$0xff]  }
  0x28   :  { %569 = vmatprep.subr.bf16.mxu1 %v740_v0  ;;  %585 = vmatprep.mubr.msk.bf16.mxu1 %vm741_vm0, %v740_v0  ;;  %v95_v5 = vsel %vm93_vm1, 65535, %v742_v4  ;;  %v641_v7 = vld [vmem:[%s959_s3 + $0x8] sm:$0xff]   ;;  %v60_v9 = vld [vmem:[#allocation2] sm:$0xff]  ;;  %vm89_vm2 = vcmask 269312   ;;  %v642_v11 = vld [vmem:[%s959_s3 + $0x10] sm:$0xff]   ;;  %s743_s17 = smov [#allocation7]  }
  0x29   :  { %560 = vmatpush3.bf16.msra.mxu0 %v637_v1  ;;  %570 = vmatpush3.bf16.msra.mxu1 %v640_v6  ;;  %v97_v8 = vand.u32 %v639_v3, %v95_v5  ;;  %v61_v10 = vpack.c.bf16 %v60_v9, %v60_v9  ;;  %v643_v12 = vld [vmem:[%s959_s3 + $0x18] sm:$0xff]   ;;  %v644_v13 = vld [vmem:[%s959_s3 + $0x20] sm:$0xff]   ;;  %v645_v14 = vld [vmem:[%s959_s3 + $0x28] sm:$0xff]   ;;  %s486_s18 = sshll.u32 %s743_s17, 4  ;;  %vm478_vm3 = vcmask 818176   ;;  %s487_s18 = int_to_ptr.vmem [resolvable:$true] %s486_s18 }
  0x2a   :  { %561 = vmatprep.subr.bf16.mxu0 %v740_v0  ;;  %571 = vmatprep.subr.bf16.mxu1 %v740_v0  ;;  %v646_v15 = vld [vmem:[%s959_s3 + $0x30] sm:$0xff]   ;;  %v647_v16 = vld [vmem:[%s959_s3 + $0x38] sm:$0xff]   ;;  %v648_v17 = vld [vmem:[%s961_s5] sm:$0xff]   ;;  %p713_p3 = scmp.lt.s32.totalorder %s487_s18, %s487_s18 }
  0x2b   :  { %v649_v18 = vld [vmem:[%s961_s5 + $0x8] sm:$0xff]   ;;  %v650_v19 = vld [vmem:[%s961_s5 + $0x10] sm:$0xff]   ;;  %v651_v20 = vld [vmem:[%s961_s5 + $0x18] sm:$0xff]  }
  0x2c   :  { %v652_v21 = vld [vmem:[%s961_s5 + $0x20] sm:$0xff]   ;;  %v653_v22 = vld [vmem:[%s961_s5 + $0x28] sm:$0xff]   ;;  %v654_v31 = vld [vmem:[%s961_s5 + $0x30] sm:$0xff]  }
  0x2d   :  { %562 = vmatpush3.bf16.msra.mxu0 %v638_v2  ;;  %572 = vmatpush3.bf16.msra.mxu1 %v641_v7  ;;  %v496_v23 = vld [vmem:[%s958_s2] ss:$0 sm:$0xff]  ;;  %v655_v32 = vld [vmem:[%s961_s5 + $0x38] sm:$0xff]   ;;  %v657_v34 = vld [vmem:[%s963_s7 + $0x8] sm:$0xff]  }
  0x2e   :  { %563 = vmatprep.subr.bf16.mxu0 %v740_v0  ;;  %573 = vmatprep.subr.bf16.mxu1 %v740_v0  ;;  %v656_v33 = vld [vmem:[%s963_s7] sm:$0xff]   ;;  %v658_v35 = vld [vmem:[%s963_s7 + $0x10] sm:$0xff]   ;;  %v659_v36 = vld [vmem:[%s963_s7 + $0x18] sm:$0xff]  }
  0x2f   :  { %v660_v37 = vld [vmem:[%s963_s7 + $0x20] sm:$0xff]   ;;  %v661_v38 = vld [vmem:[%s963_s7 + $0x28] sm:$0xff]   ;;  %v662_v47 = vld [vmem:[%s963_s7 + $0x30] sm:$0xff]  }
  0x30   :  { %v501_v39 = vld [vmem:[%s960_s4] ss:$0 sm:$0xff]  ;;  %v663_v48 = vld [vmem:[%s963_s7 + $0x38] sm:$0xff]  }
  0x31   :  { %564 = vmatpush3.bf16.msra.mxu0 %v97_v8  ;;  %574 = vmatpush3.bf16.msra.mxu1 %v642_v11  ;;  %v510_v49 = vld [vmem:[%s962_s6] ss:$0 sm:$0xff]  ;;  %s708_s6 = scalar_lea.vmem %s487_s18, 128 }
  0x32   :  { %589 = vmatprep.subr.bf16.mxu0 %v740_v0  ;;  %575 = vmatprep.subr.bf16.mxu1 %v740_v0  ;;  %v519_v57 = vld [vmem:[%s964_s8] ss:$0 sm:$0xff]  ;;  %p709_p2 = scmp.ne.s32.totalorder %s487_s18, %s708_s6  ;;  %p714_p4 = scmp.lt.s32.totalorder %s708_s6, %s708_s6 }
  0x34   :  { %566 = vmatmul.mubr.msk.bf16.vlgmr.msra.gmra.mrb[0].mxu0 %vm89_vm2, %v61_v10  ;;  %p715_p5 = por %p714_p4, %p713_p3 }
  0x35   :  { %605 = vmatprep.mubr.msk.bf16.mxu0 %vm741_vm0, %v740_v0  ;;  %576 = vmatpush3.bf16.msra.mxu1 %v643_v12 }
  0x36   :  { %577 = vmatprep.subr.bf16.mxu1 %v740_v0  ;;  %590 = vmatpush3.bf16.msra.mxu0 %v648_v17  ;;  %p716_p6 = pnand %p715_p5, %p709_p2 }
  0x37   :  { %591 = vmatprep.subr.bf16.mxu0 %v740_v0 }
  0x39   :  { %578 = vmatpush3.bf16.msra.mxu1 %v644_v13 }
  0x3a   :  { %579 = vmatprep.subr.bf16.mxu1 %v740_v0  ;;  %592 = vmatpush3.bf16.msra.mxu0 %v649_v18 }
  0x3b   :  { %593 = vmatprep.subr.bf16.mxu0 %v740_v0 }
  0x3d   :  { %580 = vmatpush3.bf16.msra.mxu1 %v645_v14 }
  0x3e   :  { %581 = vmatprep.subr.bf16.mxu1 %v740_v0  ;;  %594 = vmatpush3.bf16.msra.mxu0 %v650_v19 }
  0x3f   :  { %595 = vmatprep.subr.bf16.mxu0 %v740_v0 }
  0x41   :  { %582 = vmatpush3.bf16.msra.mxu1 %v646_v15 }
  0x42   :  { %583 = vmatprep.subr.bf16.mxu1 %v740_v0  ;;  %596 = vmatpush3.bf16.msra.mxu0 %v651_v20 }
  0x43   :  { %597 = vmatprep.subr.bf16.mxu0 %v740_v0 }
  0x45   :  { %584 = vmatpush3.bf16.msra.mxu1 %v647_v16 }
  0x46   :  { %609 = vmatprep.subr.bf16.mxu1 %v740_v0  ;;  %598 = vmatpush3.bf16.msra.mxu0 %v652_v21 }
  0x47   :  { %599 = vmatprep.subr.bf16.mxu0 %v740_v0 }
  0x4a   :  { %600 = vmatpush3.bf16.msra.mxu0 %v653_v22 }
  0x4b   :  { %601 = vmatprep.subr.bf16.mxu0 %v740_v0 }
  0x4e   :  { %602 = vmatpush3.bf16.msra.mxu0 %v654_v31 }
  0x4f   :  { %603 = vmatprep.subr.bf16.mxu0 %v740_v0 }
  0x52   :  { %604 = vmatpush3.bf16.msra.mxu0 %v655_v32 }
 0x107   :  { %v133_v24 = vpop.f32.mrb[0].mxu0 }
 0x108   :  { %v134_v25 = vadd.f32 %v496_v23, %v133_v24  ;;  %v567_v26 = vpop.f32.mrb[1].mxu0 }
 0x109   :  { %v136_v27 = vpop.f32.mrb[2].mxu0 }
 0x10a   :  { %v139_v28 = vmax.f32 %v134_v25, 0.0  ;;  %v568_v29 = vpop.f32.mrb[3].mxu0 }
 0x10c   :  { %v140_v30 = vpack.c.bf16 %v139_v28, %v139_v28 }
 0x10e   :  { %586 = vmatmul.mubr.bf16.vlgmr.msra.gmra.mrb[0].mxu1 %v140_v30 }
 0x10f   :  { %625 = vmatprep.mubr.msk.bf16.mxu1 %vm741_vm0, %v740_v0  ;;  %610 = vmatpush3.bf16.msra.mxu1 %v656_v33 }
 0x110   :  { %611 = vmatprep.subr.bf16.mxu1 %v740_v0 }
 0x113   :  { %612 = vmatpush3.bf16.msra.mxu1 %v657_v34 }
 0x114   :  { %613 = vmatprep.subr.bf16.mxu1 %v740_v0 }
 0x117   :  { %614 = vmatpush3.bf16.msra.mxu1 %v658_v35 }
 0x118   :  { %615 = vmatprep.subr.bf16.mxu1 %v740_v0 }
 0x11b   :  { %616 = vmatpush3.bf16.msra.mxu1 %v659_v36 }
 0x11c   :  { %617 = vmatprep.subr.bf16.mxu1 %v740_v0 }
 0x11f   :  { %618 = vmatpush3.bf16.msra.mxu1 %v660_v37 }
 0x120   :  { %619 = vmatprep.subr.bf16.mxu1 %v740_v0 }
 0x123   :  { %620 = vmatpush3.bf16.msra.mxu1 %v661_v38 }
 0x124   :  { %621 = vmatprep.subr.bf16.mxu1 %v740_v0 }
 0x127   :  { %622 = vmatpush3.bf16.msra.mxu1 %v662_v47 }
 0x128   :  { %623 = vmatprep.subr.bf16.mxu1 %v740_v0 }
 0x12b   :  { %624 = vmatpush3.bf16.msra.mxu1 %v663_v48 }
 0x1e1   :  { %v246_v40 = vpop.f32.mrb[0].mxu1 }
 0x1e2   :  { %v247_v41 = vadd.f32 %v501_v39, %v246_v40  ;;  %v587_v42 = vpop.f32.mrb[1].mxu1 }
 0x1e3   :  { %v249_v43 = vpop.f32.mrb[2].mxu1 }
 0x1e4   :  { %v252_v44 = vmax.f32 %v247_v41, 0.0  ;;  %v588_v45 = vpop.f32.mrb[3].mxu1 }
 0x1e6   :  { %v253_v46 = vpack.c.bf16 %v252_v44, %v252_v44 }
 0x1e8   :  { %606 = vmatmul.mubr.bf16.vlgmr.msra.gmra.mrb[4].mxu0 %v253_v46 }
 0x2bb   :  { %v359_v50 = vpop.f32.mrb[4].mxu0 }
 0x2bc   :  { %v360_v51 = vadd.f32 %v510_v49, %v359_v50  ;;  %v607_v52 = vpop.f32.mrb[5].mxu0 }
 0x2bd   :  { %v362_v53 = vpop.f32.mrb[6].mxu0 }
 0x2be   :  { %v365_v54 = vmax.f32 %v360_v51, 0.0  ;;  %v608_v55 = vpop.f32.mrb[7].mxu0 }
 0x2c0   :  { %v366_v56 = vpack.c.bf16 %v365_v54, %v365_v54 }
 0x2c2   :  { %626 = vmatmul.mubr.bf16.vlgmr.msra.gmra.mrb[4].mxu1 %v366_v56 }
 0x395   :  { %v472_v58 = vpop.f32.mrb[4].mxu1 }
 0x396   :  { %v473_v59 = vadd.f32 %v519_v57, %v472_v58  ;;  %v627_v60 = vpop.f32.mrb[5].mxu1 }
 0x397   :  { %v475_v61 = vpop.f32.mrb[6].mxu1 }
 0x398   :  { %v628_v62 = vpop.f32.mrb[7].mxu1  ;;  %479 = vst.msk [vmem:[#allocation7] sm:$0xff] %vm478_vm3, %v473_v59 }
 0x399   :  { %719 = shalt.err (!%p716_p6)
}
 0x39a   :  { %s720_s8 = scalar_lea.hbm %s965_s9, 128 }
 0x39b   :  { %p721_p7 = scmp.ne.s32.totalorder %s965_s9, %s720_s8  ;;  %p724_p8 = scmp.lt.u32.totalorder %s720_s8, %s965_s9 }
 0x39d   :  { %p726_p9 = pnand %p724_p8, %p721_p7 }
 0x39f   :  { %729 = shalt.err (!%p726_p9)
}
 0x3a0   :  { %489 = dma.vmem_to_hbm [thread:$0]  %s487_s18, 128, %s965_s9, [#allocation4]  }
 0x3a1   :  { %734 = dma.done.wait [#allocation4], 128  }
 0x3a2   :  { %735 = vsyncadd [#allocation4], 4294967168 }
 0x3a3   :  { %493 = vsyncpa [#allocation3], 1 }
 0x3a4   :  { %494 = vsyncpa [#allocation6], 1 }
 0x3a5   :  { %495 = vsyncpa [#allocation4], 1 }

</bundles_post_ra>
